<compile_context>
chip_gen: v5e
topology: v5e:2x2
jax: 0.10.0
libtpu: 0.0.40
codegen_flags: <defaults>
</compile_context>

<pallas_src>
import jax
import jax.numpy as jnp
from jax.experimental import pallas as pl
from jax.experimental.pallas import tpu as pltpu


def _round_up(x, m):
    return ((x + m - 1) // m) * m


def zsld_kernel(x_ref, ws_ref, bs_ref, wh_ref, bh_ref, out_ref):
    # Shared trunk: h = ReLU(x @ W_shared + b_shared), f32 accumulation on MXU.
    h = jnp.dot(x_ref[...], ws_ref[...], preferred_element_type=jnp.float32)
    h = jnp.maximum(h + bs_ref[...], 0.0)
    # Fused heads: single lane-dense matmul producing [gan | aux | zero-pad].
    h = h.astype(wh_ref.dtype)
    out = jnp.dot(h, wh_ref[...], preferred_element_type=jnp.float32) + bh_ref[...]
    out_ref[...] = out.astype(out_ref.dtype)


def zsld_forward(x, w_shared, b_shared, w_gan, b_gan, w_aux, b_aux,
                 *, compute_dtype=jnp.bfloat16, block_b=512):
    """x: (B, input_dim). Weights already transposed to (in, out).

    Returns (gan_logits (B,1), aux_logits (B,num_classes)) in float32.
    """
    B, D = x.shape
    H = w_shared.shape[1]
    C = w_aux.shape[1]

    # Lane-dense padded dims (exact: padding is zeros, sliced away below).
    Hp = _round_up(max(H, 128), 128)          # hidden: 64 -> 128
    Np = _round_up(max(1 + C, 128), 128)      # fused heads: 151 -> 256

    # Batch tile: full batch when small, else 512-row tiles (well within VMEM
    # on v5e/v6e/v7x even double-buffered).
    tb = B if B <= block_b else block_b
    grid = (pl.cdiv(B, tb),)

    xc = x.astype(compute_dtype)

    # Shared layer, zero-padded to Hp columns.
    ws = jnp.pad(w_shared.astype(compute_dtype), ((0, 0), (0, Hp - H)))
    bs = jnp.pad(b_shared.astype(jnp.float32), (0, Hp - H)).reshape(1, Hp)

    # Fused heads: [w_gan | w_aux], zero-padded to (Hp, Np); biases likewise.
    w_heads = jnp.concatenate([w_gan, w_aux], axis=1)                  # (H, 1+C)
    w_heads = jnp.pad(w_heads.astype(compute_dtype),
                      ((0, Hp - H), (0, Np - (1 + C))))                # (Hp, Np)
    b_heads = jnp.concatenate([b_gan, b_aux], axis=0)                  # (1+C,)
    b_heads = jnp.pad(b_heads.astype(jnp.float32),
                      (0, Np - (1 + C))).reshape(1, Np)

    itemsize = jnp.dtype(compute_dtype).itemsize
    cost = pl.CostEstimate(
        flops=2 * B * D * Hp + 2 * B * Hp * Np,
        transcendentals=0,
        bytes_accessed=(B * D * itemsize          # x
                        + D * Hp * itemsize       # W_shared
                        + Hp * Np * itemsize      # W_heads
                        + (Hp + Np) * 4           # biases
                        + B * Np * 4),            # fused output
    )

    out = pl.pallas_call(
        zsld_kernel,
        out_shape=jax.ShapeDtypeStruct((B, Np), jnp.float32),
        grid_spec=pltpu.PrefetchScalarGridSpec(
            num_scalar_prefetch=0,
            grid=grid,
            in_specs=[
                pl.BlockSpec((tb, D), lambda i: (i, 0)),    # x tile
                pl.BlockSpec((D, Hp), lambda i: (0, 0)),    # W_shared (in, out)
                pl.BlockSpec((1, Hp), lambda i: (0, 0)),    # b_shared
                pl.BlockSpec((Hp, Np), lambda i: (0, 0)),   # fused W_heads
                pl.BlockSpec((1, Np), lambda i: (0, 0)),    # fused b_heads
            ],
            out_specs=pl.BlockSpec((tb, Np), lambda i: (i, 0)),  # lane-dense slab
        ),
        compiler_params=pltpu.CompilerParams(
            dimension_semantics=("parallel",)),
        cost_estimate=cost,
    )(xc, ws, bs, w_heads, b_heads)

    # Free slices back to the module's two outputs.
    gan = out[:, :1]
    aux = out[:, 1:1 + C]
    return gan, aux


if __name__ == "__main__":
    # Small, deterministic shapes consistent with the module.
    batch = 8
    input_dim = 256
    h_dim = 64          # cfg.ZSL.h_dim stand-in
    num_classes = 150

    key = jax.random.PRNGKey(0)
    kx, k1, k2, k3, k4, k5, k6 = jax.random.split(key, 7)

    x = jax.random.normal(kx, (batch, input_dim), dtype=jnp.float32)

    # Deterministic parameter init (PyTorch Linear weight is (out, in); we
    # store the transposed (in, out) form directly for the kernel).
    w_shared = jax.random.normal(k1, (input_dim, h_dim), jnp.float32) * 0.05
    b_shared = jax.random.normal(k2, (h_dim,), jnp.float32) * 0.05
    w_gan = jax.random.normal(k3, (h_dim, 1), jnp.float32) * 0.05
    b_gan = jax.random.normal(k4, (1,), jnp.float32) * 0.05
    w_aux = jax.random.normal(k5, (h_dim, num_classes), jnp.float32) * 0.05
    b_aux = jax.random.normal(k6, (num_classes,), jnp.float32) * 0.05

    gan, aux = zsld_forward(x, w_shared, b_shared, w_gan, b_gan, w_aux, b_aux)
    jax.block_until_ready((gan, aux))

    # Pure-JAX reference mirroring the kernel's bf16-input / f32-accumulate math.
    cd = jnp.bfloat16
    xq = x.astype(cd).astype(jnp.float32)
    wsq = w_shared.astype(cd).astype(jnp.float32)
    h_ref = jnp.maximum(xq @ wsq + b_shared, 0.0)
    hq = h_ref.astype(cd).astype(jnp.float32)
    gan_ref = hq @ w_gan.astype(cd).astype(jnp.float32) + b_gan
    aux_ref = hq @ w_aux.astype(cd).astype(jnp.float32) + b_aux

    assert gan.shape == (batch, 1) and aux.shape == (batch, num_classes)
    assert jnp.allclose(gan, gan_ref, atol=1e-3, rtol=1e-3)
    assert jnp.allclose(aux, aux_ref, atol=1e-3, rtol=1e-3)

    print("KERNEL_OK")
</pallas_src>

<mosaic_0001>
module attributes {stable_mosaic.version = 11 : i64} {
  func.func @zsld_kernel(%arg0: i32, %arg1: memref<8x256xbf16, #tpu.memory_space<vmem>>, %arg2: memref<256x128xbf16, #tpu.memory_space<vmem>>, %arg3: memref<1x128xf32, #tpu.memory_space<vmem>>, %arg4: memref<128x256xbf16, #tpu.memory_space<vmem>>, %arg5: memref<1x256xf32, #tpu.memory_space<vmem>>, %arg6: memref<8x256xf32, #tpu.memory_space<vmem>>) attributes {dimension_semantics = [#tpu.dimension_semantics<parallel>], iteration_bounds = array<i64: 1>, scalar_prefetch = 0 : i64, scratch_operands = 0 : i64, tpu.core_type = #tpu.core_type<tc>, window_params = [{transform_indices = @transform_0, window_bounds = array<i64: 8, 256>}, {pipeline_mode = #tpu.pipeline_mode<synchronous>, transform_indices = @transform_1, window_bounds = array<i64: 256, 128>}, {pipeline_mode = #tpu.pipeline_mode<synchronous>, transform_indices = @transform_2, window_bounds = array<i64: 1, 128>}, {pipeline_mode = #tpu.pipeline_mode<synchronous>, transform_indices = @transform_3, window_bounds = array<i64: 128, 256>}, {pipeline_mode = #tpu.pipeline_mode<synchronous>, transform_indices = @transform_4, window_bounds = array<i64: 1, 256>}, {transform_indices = @transform_5, window_bounds = array<i64: 8, 256>}]} {
    %c0 = arith.constant 0 : index
    %c0_0 = arith.constant 0 : index
    %0 = vector.load %arg1[%c0, %c0_0] : memref<8x256xbf16, #tpu.memory_space<vmem>>, vector<8x256xbf16>
    %c0_1 = arith.constant 0 : index
    %c0_2 = arith.constant 0 : index
    %1 = vector.load %arg2[%c0_1, %c0_2] : memref<256x128xbf16, #tpu.memory_space<vmem>>, vector<256x128xbf16>
    %cst = arith.constant dense<0.000000e+00> : vector<8x128xf32>
    %2 = tpu.matmul %0, %1, %cst {dimension_numbers = #tpu.dot_dimension_numbers<[1], [0], [0], [1], [0, 0, 1, 1], [], []>} : vector<8x256xbf16>, vector<256x128xbf16>, vector<8x128xf32> -> vector<8x128xf32>
    %c0_3 = arith.constant 0 : index
    %c0_4 = arith.constant 0 : index
    %3 = vector.load %arg3[%c0_3, %c0_4] : memref<1x128xf32, #tpu.memory_space<vmem>>, vector<1x128xf32>
    %4 = vector.broadcast %3 : vector<1x128xf32> to vector<8x128xf32>
    %5 = arith.addf %2, %4 : vector<8x128xf32>
    %cst_5 = arith.constant 0.000000e+00 : f32
    %6 = vector.broadcast %cst_5 : f32 to vector<8x128xf32>
    %7 = arith.maximumf %5, %6 : vector<8x128xf32>
    %8 = arith.truncf %7 : vector<8x128xf32> to vector<8x128xbf16>
    %c0_6 = arith.constant 0 : index
    %c0_7 = arith.constant 0 : index
    %9 = vector.load %arg4[%c0_6, %c0_7] : memref<128x256xbf16, #tpu.memory_space<vmem>>, vector<128x256xbf16>
    %cst_8 = arith.constant dense<0.000000e+00> : vector<8x256xf32>
    %10 = tpu.matmul %8, %9, %cst_8 {dimension_numbers = #tpu.dot_dimension_numbers<[1], [0], [0], [1], [0, 0, 1, 1], [], []>} : vector<8x128xbf16>, vector<128x256xbf16>, vector<8x256xf32> -> vector<8x256xf32>
    %c0_9 = arith.constant 0 : index
    %c0_10 = arith.constant 0 : index
    %11 = vector.load %arg5[%c0_9, %c0_10] : memref<1x256xf32, #tpu.memory_space<vmem>>, vector<1x256xf32>
    %12 = vector.broadcast %11 : vector<1x256xf32> to vector<8x256xf32>
    %13 = arith.addf %10, %12 : vector<8x256xf32>
    %c0_11 = arith.constant 0 : index
    %c0_12 = arith.constant 0 : index
    %14 = vector.load %arg6[%c0_11, %c0_12] : memref<8x256xf32, #tpu.memory_space<vmem>>, vector<8x256xf32>
    tpu.vector_store %arg6[%c0_11, %c0_12], %13 {strides = array<i32>} : memref<8x256xf32, #tpu.memory_space<vmem>>, vector<8x256xf32>,
    return
  }
  func.func @transform_0(%arg0: i32) -> (i32, i32) {
    %c0_i32 = arith.constant 0 : i32
    %c0_i32_0 = arith.constant 0 : i32
    return %arg0, %c0_i32 : i32, i32
  }
  func.func @transform_1(%arg0: i32) -> (i32, i32) {
    %c0_i32 = arith.constant 0 : i32
    %c0_i32_0 = arith.constant 0 : i32
    %c0_i32_1 = arith.constant 0 : i32
    return %c0_i32, %c0_i32_0 : i32, i32
  }
  func.func @transform_2(%arg0: i32) -> (i32, i32) {
    %c0_i32 = arith.constant 0 : i32
    %c0_i32_0 = arith.constant 0 : i32
    %c0_i32_1 = arith.constant 0 : i32
    return %c0_i32, %c0_i32_0 : i32, i32
  }
  func.func @transform_3(%arg0: i32) -> (i32, i32) {
    %c0_i32 = arith.constant 0 : i32
    %c0_i32_0 = arith.constant 0 : i32
    %c0_i32_1 = arith.constant 0 : i32
    return %c0_i32, %c0_i32_0 : i32, i32
  }
  func.func @transform_4(%arg0: i32) -> (i32, i32) {
    %c0_i32 = arith.constant 0 : i32
    %c0_i32_0 = arith.constant 0 : i32
    %c0_i32_1 = arith.constant 0 : i32
    return %c0_i32, %c0_i32_0 : i32, i32
  }
  func.func @transform_5(%arg0: i32) -> (i32, i32) {
    %c0_i32 = arith.constant 0 : i32
    %c0_i32_0 = arith.constant 0 : i32
    return %arg0, %c0_i32 : i32, i32
  }
}

</mosaic_0001>

<bundles_post_ra>
// kernel: tpu_custom_call.1
= control target key start
LH: loop header
LB: loop body
LE: loop exit
PB: predicated region body
PF: predicated region fallthrough
CT: control target
= control target key end

     0   :  { %10 = vsyncpa [#allocation3], 0  ;;  %s709_s0 = inlined_call_operand.hbm [shape: bf16[8,256], index: 0, kind: input, shape index: {}]   ;;  %s710_s1 = inlined_call_operand.hbm [shape: bf16[256,128], index: 1, kind: input, shape index: {}]   ;;  %s711_s2 = inlined_call_operand.vmem [shape: f32[1,128], index: 2, kind: input, shape index: {}]   ;;  %s712_s3 = inlined_call_operand.hbm [shape: bf16[128,256], index: 3, kind: input, shape index: {}]   ;;  %s713_s4 = inlined_call_operand.vmem [shape: f32[1,256], index: 4, kind: input, shape index: {}]   ;;  %s714_s5 = inlined_call_operand.hbm [shape: f32[8,256], index: 5, kind: output, shape index: {}]  }
   0x1   :  { %11 = vsyncpa [#allocation6], 0  ;;  %s28_s20 = sshll.u32 %s710_s1, 4  ;;  %s29_s20 = int_to_ptr.hbm [resolvable:$true] %s28_s20 }
   0x2   :  { %12 = vsyncpa [#allocation4], 0  ;;  %s653_s21 = smov [#allocation5]   ;;  %s18_s25 = sshll.u32 %s709_s0, 4  ;;  %s19_s25 = int_to_ptr.hbm [resolvable:$true] %s18_s25 }
   0x3   :  { %s30_s22 = sshll.u32 %s653_s21, 4  ;;  %s654_s26 = smov 64   ;;  %s31_s22 = int_to_ptr.vmem [resolvable:$true] %s30_s22 }
   0x4   :  { %s655_s27 = smov 4   ;;  %s656_s28 = smov [#allocation2]  }
   0x5   :  { %36 = dma.hbm_to_vmem [thread:$0]  %s29_s20, 2048, %s31_s22, [#allocation6], %s654_s26, %s654_s26, %s655_s27  }
   0x6   :  { %s20_s29 = sshll.u32 %s656_s28, 4  ;;  %s43_s7 = sshll.u32 %s712_s3, 4  ;;  %s21_s29 = int_to_ptr.vmem [resolvable:$true] %s20_s29  ;;  %s44_s7 = int_to_ptr.hbm [resolvable:$true] %s43_s7 }
   0x7   :  { %23 = dma.hbm_to_vmem [thread:$0]  %s19_s25, 128, %s21_s29, [#allocation3]  }
   0x8   :  { %s657_s1 = smov [#allocation7]   ;;  %s658_s9 = smov 128  }
   0x9   :  { %s45_s8 = sshll.u32 %s657_s1, 4  ;;  %s659_s10 = smov 8   ;;  %s46_s8 = int_to_ptr.vmem [resolvable:$true] %s45_s8 }
   0xa   :  { %51 = dma.hbm_to_vmem [thread:$0]  %s44_s7, 2048, %s46_s8, [#allocation6], %s658_s9, %s658_s9, %s659_s10  }
   0xb   :  { %647 = dma.done.wait [#allocation3], 128  }
   0xc   :  { %648 = vsyncadd [#allocation3], 4294967168 }
   0xd   :  { %649 = dma.done.wait [#allocation6], 4096  }
   0xe   :  { %650 = vsyncadd [#allocation6], 4294963200  ;;  %v517_v0 = vld [vmem:[#allocation5 + $0x38] sm:$0xff]  ;;  %v516_v2 = vld [vmem:[#allocation5 + $0x30] sm:$0xff]  ;;  %s660_s13 = smov [#allocation8]   ;;  %s371_s16 = sshll.u32 %s714_s5, 4  ;;  %s372_s16 = int_to_ptr.hbm [resolvable:$true] %s371_s16 }
   0xf   :  { %v525_v1 = vld [vmem:[#allocation5 + $0x78] sm:$0xff]  ;;  %206 = vmatpush.bf16.msra.mxu0 %v517_v0  ;;  %v524_v3 = vld [vmem:[#allocation5 + $0x70] sm:$0xff]  ;;  %v515_v4 = vld [vmem:[#allocation5 + $0x28] sm:$0xff]  ;;  %s369_s14 = sshll.u32 %s660_s13, 4  ;;  %s370_s14 = int_to_ptr.vmem [resolvable:$true] %s369_s14 }
  0x10   :  { %219 = vmatpush.bf16.msra.mxu1 %v525_v1  ;;  %v523_v5 = vld [vmem:[#allocation5 + $0x68] sm:$0xff]  ;;  %v504_v6 = vld [vmem:[#allocation7 + $0x70] sm:$0xf]  ;;  %v541_v7 = vld [vmem:[#allocation7 + $0x74] sm:$0xf0] }
  0x11   :  { %v540_v8 = vld [vmem:[#allocation7 + $0x74] sm:$0xf]  ;;  %v506_v9 = vld [vmem:[#allocation7 + $0x78] sm:$0xf0]  ;;  %v505_v10 = vor.u32 %v541_v7, %v504_v6  ;;  %v496_v12 = vld [vmem:[#allocation7 + $0x60] sm:$0xf] }
  0x12   :  { %v509_v11 = vor.u32 %v540_v8, %v506_v9  ;;  %v539_v13 = vld [vmem:[#allocation7 + $0x64] sm:$0xf0]  ;;  %v538_v14 = vld [vmem:[#allocation7 + $0x64] sm:$0xf]  ;;  %v498_v15 = vld [vmem:[#allocation7 + $0x68] sm:$0xf0] }
  0x13   :  { %207 = vmatpush.bf16.msra.mxu0 %v516_v2  ;;  %v514_v16 = vld [vmem:[#allocation5 + $0x20] sm:$0xff]  ;;  %336 = vmatpush.bf16.msra.mxu2 %v505_v10  ;;  %v497_v18 = vor.u32 %v539_v13, %v496_v12  ;;  %v501_v19 = vor.u32 %v538_v14, %v498_v15  ;;  %v488_v20 = vld [vmem:[#allocation7 + $0x50] sm:$0xf]  ;;  %v537_v21 = vld [vmem:[#allocation7 + $0x54] sm:$0xf0] }
  0x14   :  { %220 = vmatpush.bf16.msra.mxu1 %v524_v3  ;;  %v522_v17 = vld [vmem:[#allocation5 + $0x60] sm:$0xff]  ;;  %349 = vmatpush.bf16.msra.mxu3 %v509_v11  ;;  %v536_v22 = vld [vmem:[#allocation7 + $0x54] sm:$0xf]  ;;  %v490_v23 = vld [vmem:[#allocation7 + $0x58] sm:$0xf0]  ;;  %v489_v26 = vor.u32 %v537_v21, %v488_v20 }
  0x15   :  { %v513_v24 = vld [vmem:[#allocation5 + $0x18] sm:$0xff]  ;;  %v493_v27 = vor.u32 %v536_v22, %v490_v23  ;;  %v480_v28 = vld [vmem:[#allocation7 + $0x40] sm:$0xf]  ;;  %v535_v29 = vld [vmem:[#allocation7 + $0x44] sm:$0xf0] }
  0x16   :  { %v521_v25 = vld [vmem:[#allocation5 + $0x58] sm:$0xff]  ;;  %v534_v30 = vld [vmem:[#allocation7 + $0x44] sm:$0xf]  ;;  %v482_v31 = vld [vmem:[#allocation7 + $0x48] sm:$0xf0]  ;;  %v481_v34 = vor.u32 %v535_v29, %v480_v28 }
  0x17   :  { %208 = vmatpush.bf16.msra.mxu0 %v515_v4  ;;  %337 = vmatpush.bf16.msra.mxu2 %v497_v18  ;;  %v512_v32 = vld [vmem:[#allocation5 + $0x10] sm:$0xff]  ;;  %v485_v35 = vor.u32 %v534_v30, %v482_v31  ;;  %v533_v37 = vld [vmem:[#allocation7 + $0x34] sm:$0xf0]  ;;  %v474_v39 = vld [vmem:[#allocation7 + $0x38] sm:$0xf0] }
  0x18   :  { %221 = vmatpush.bf16.msra.mxu1 %v523_v5  ;;  %350 = vmatpush.bf16.msra.mxu3 %v501_v19  ;;  %v520_v33 = vld [vmem:[#allocation5 + $0x50] sm:$0xff]  ;;  %v511_v40 = vld [vmem:[#allocation5 + $0x8] sm:$0xff]  ;;  %v66_v42 = vld [vmem:[#allocation2] sm:$0xff] }
  0x19   :  { %v472_v36 = vld [vmem:[#allocation7 + $0x30] sm:$0xf]  ;;  %v532_v38 = vld [vmem:[#allocation7 + $0x34] sm:$0xf]  ;;  %v519_v41 = vld [vmem:[#allocation5 + $0x48] sm:$0xff]  ;;  %v104_v49 = vunpack.c.l.b16 %v66_v42  ;;  %v105_v50 = vunpack.c.h.b16 %v66_v42 }
  0x1a   :  { %v473_v43 = vor.u32 %v533_v37, %v472_v36  ;;  %v477_v44 = vor.u32 %v532_v38, %v474_v39  ;;  %v464_v45 = vld [vmem:[#allocation7 + $0x20] sm:$0xf]  ;;  %v531_v46 = vld [vmem:[#allocation7 + $0x24] sm:$0xf0]  ;;  %v530_v47 = vld [vmem:[#allocation7 + $0x24] sm:$0xf] }
  0x1b   :  { %209 = vmatpush.bf16.msra.mxu0 %v514_v16  ;;  %338 = vmatpush.bf16.msra.mxu2 %v489_v26  ;;  %v466_v48 = vld [vmem:[#allocation7 + $0x28] sm:$0xf0]  ;;  %v465_v51 = vor.u32 %v531_v46, %v464_v45  ;;  %v510_v53 = vld [vmem:[#allocation5] sm:$0xff]  ;;  %v106_v55 = vpack.c.b16 %v104_v49, %v104_v49  ;;  %v107_v56 = vpack.c.b16 %v105_v50, %v105_v50  ;;  %v456_v57 = vld [vmem:[#allocation7 + $0x10] sm:$0xf] }
  0x1c   :  { %222 = vmatpush.bf16.msra.mxu1 %v522_v17  ;;  %351 = vmatpush.bf16.msra.mxu3 %v493_v27  ;;  %v469_v52 = vor.u32 %v530_v47, %v466_v48  ;;  %v518_v54 = vld [vmem:[#allocation5 + $0x40] sm:$0xff]  ;;  %v529_v58 = vld [vmem:[#allocation7 + $0x14] sm:$0xf0]  ;;  %v528_v59 = vld [vmem:[#allocation7 + $0x14] sm:$0xf] }
  0x1d   :  { %v457_v60 = vor.u32 %v529_v58, %v456_v57  ;;  %v458_v61 = vld [vmem:[#allocation7 + $0x18] sm:$0xf0]  ;;  %v448_v63 = vld [vmem:[#allocation7] sm:$0xf]  ;;  %v527_v0 = vld [vmem:[#allocation7 + $0x4] sm:$0xf0] }
  0x1e   :  { %v461_v62 = vor.u32 %v528_v59, %v458_v61  ;;  %v526_v1 = vld [vmem:[#allocation7 + $0x4] sm:$0xf]  ;;  %v449_v2 = vor.u32 %v527_v0, %v448_v63  ;;  %v450_v3 = vld [vmem:[#allocation7 + $0x8] sm:$0xf0]  ;;  %v550_v5 = vld [vmem:[%s711_s2] ss:$0 sm:$0xff] }
  0x1f   :  { %210 = vmatpush.bf16.msra.mxu0 %v513_v24  ;;  %339 = vmatpush.bf16.msra.mxu2 %v481_v34  ;;  %v453_v4 = vor.u32 %v526_v1, %v450_v3  ;;  %v250_v14 = vld [vmem:[%s713_s4] sm:$0x3] }
  0x20   :  { %223 = vmatpush.bf16.msra.mxu1 %v521_v25  ;;  %352 = vmatpush.bf16.msra.mxu3 %v485_v35  ;;  %v252_v15 = vperm.slane %v250_v14, 0  ;;  %v253_v16 = vperm.slane %v250_v14, 1 }
  0x23   :  { %211 = vmatpush.bf16.msra.mxu0 %v512_v32  ;;  %340 = vmatpush.bf16.msra.mxu2 %v473_v43 }
  0x24   :  { %224 = vmatpush.bf16.msra.mxu1 %v520_v33  ;;  %353 = vmatpush.bf16.msra.mxu3 %v477_v44 }
  0x27   :  { %212 = vmatpush.bf16.msra.mxu0 %v511_v40  ;;  %341 = vmatpush.bf16.msra.mxu2 %v465_v51 }
  0x28   :  { %225 = vmatpush.bf16.msra.mxu1 %v519_v41  ;;  %354 = vmatpush.bf16.msra.mxu3 %v469_v52 }
  0x2b   :  { %213 = vmatpush.bf16.msra.mxu0 %v510_v53  ;;  %342 = vmatpush.bf16.msra.mxu2 %v457_v60 }
  0x2c   :  { %226 = vmatpush.bf16.msra.mxu1 %v518_v54  ;;  %355 = vmatpush.bf16.msra.mxu3 %v461_v62 }
  0x2e   :  { %214 = vmatmul.bf16.vlgmr.msra.gmra.mxu0 %v106_v55 }
  0x2f   :  { %227 = vmatmul.bf16.vlgmr.msra.gmra.mxu1 %v107_v56  ;;  %343 = vmatpush.bf16.msra.mxu2 %v449_v2 }
  0x30   :  { %356 = vmatpush.bf16.msra.mxu3 %v453_v4 }
  0xab   :  { %v215_v6 = vpop.f32.mrf.mxu0 }
  0xac   :  { %v228_v7 = vpop.f32.mrf.mxu1  ;;  %v216_v8 = vadd.f32 %v550_v5, %v215_v6 }
  0xae   :  { %v229_v9 = vadd.f32 %v228_v7, %v216_v8 }
  0xb0   :  { %v232_v10 = vmax.f32 %v229_v9, 0.0 }
  0xb2   :  { %v233_v11 = vpack.c.bf16 %v232_v10, %v232_v10 }
  0xb3   :  { %v217_v12 = vpop.f32.mrf.mxu0 }
  0xb4   :  { %v230_v13 = vpop.f32.mrf.mxu1  ;;  %344 = vmatmul.bf16.vlgmr.msra.gmra.mxu2 %v233_v11  ;;  %357 = vmatmul.bf16.vlgmr.msra.gmra.mxu3 %v233_v11 }
 0x137   :  { %v345_v17 = vpop.f32.mrf.mxu2  ;;  %v358_v18 = vpop.f32.mrf.mxu3 }
 0x138   :  { %v346_v19 = vadd.f32 %v345_v17, %v252_v15  ;;  %v359_v20 = vadd.f32 %v358_v18, %v253_v16 }
 0x13a   :  { %362 = vst [vmem:[#allocation8] sm:$0xff] %v346_v19 }
 0x13b   :  { %363 = vst [vmem:[#allocation8 + $0x8] sm:$0xff] %v359_v20 }
 0x13c   :  { %374 = dma.vmem_to_hbm [thread:$0]  %s370_s14, 256, %s372_s16, [#allocation4]  }
 0x13f   :  { %v347_v21 = vpop.f32.mrf.mxu2  ;;  %v360_v22 = vpop.f32.mrf.mxu3 }
 0x140   :  { %651 = dma.done.wait [#allocation4], 256  }
 0x141   :  { %652 = vsyncadd [#allocation4], 4294967040 }
 0x142   :  { %379 = vsyncpa [#allocation3], 1 }
 0x143   :  { %380 = vsyncpa [#allocation6], 1 }
 0x144   :  { %381 = vsyncpa [#allocation4], 1 }

</bundles_post_ra>
